<compile_context>
chip_gen: v6e
topology: v6e:2x2x1
jax: 0.10.0
libtpu: 0.0.40
codegen_flags: <defaults>
</compile_context>

<pallas_src>
import math
from functools import partial

import jax
import jax.numpy as jnp
from jax.experimental import pallas as pl
from jax.experimental.pallas import tpu as pltpu


# Safe on all generations (v5e default is 16 MiB; v6e/v7x default is 32 MiB).
VMEM_LIMIT_BYTES = 32 * 1024 * 1024


def _pick_tile(dim, candidates):
    """Largest candidate tile that evenly divides `dim`, else the full dim."""
    for c in candidates:
        if dim % c == 0:
            return c
    return dim


# ---------------------- fused RMSNorm + matmul kernel ------------------------
def _rmsnorm_matmul_kernel(x_ref, g_ref, w_ref, o_ref, *, eps):
    x = x_ref[...].astype(jnp.float32)                       # (tm, K)
    ms = jnp.mean(x * x, axis=-1, keepdims=True)
    xn = x * jax.lax.rsqrt(ms + eps) * g_ref[...].astype(jnp.float32)
    xn = xn.astype(w_ref.dtype)                              # torch RMSNorm casts back
    o_ref[...] = jnp.dot(
        xn, w_ref[...], preferred_element_type=jnp.float32
    ).astype(o_ref.dtype)


def rmsnorm_matmul(x, g, w, eps):
    # x: (M, K) bf16, g: (K,) f32, w: (K, N) bf16 -> (M, N) bf16
    M, K = x.shape
    _, N = w.shape
    tm = _pick_tile(M, (256, 128))
    tn = _pick_tile(N, (512, 256, 128))
    cost = pl.CostEstimate(
        flops=2 * M * N * K,
        transcendentals=0,
        bytes_accessed=(M * K + M * N) * x.dtype.itemsize + K * N * w.dtype.itemsize,
    )
    return pl.pallas_call(
        partial(_rmsnorm_matmul_kernel, eps=eps),
        grid=(M // tm, N // tn),
        in_specs=[
            pl.BlockSpec((tm, K), lambda m, n: (m, 0)),
            pl.BlockSpec((1, K), lambda m, n: (0, 0)),
            pl.BlockSpec((K, tn), lambda m, n: (0, n)),
        ],
        out_specs=pl.BlockSpec((tm, tn), lambda m, n: (m, n)),
        out_shape=jax.ShapeDtypeStruct((M, N), x.dtype),
        compiler_params=pltpu.CompilerParams(
            dimension_semantics=("parallel", "parallel"),
            vmem_limit_bytes=VMEM_LIMIT_BYTES,
        ),
        cost_estimate=cost,
    )(x, g.reshape(1, K), w)


# ---------------------------- tiled matmul kernel ----------------------------
def _matmul_kernel(x_ref, w_ref, o_ref, acc_ref):
    @pl.when(pl.program_id(2) == 0)
    def _():
        acc_ref[...] = jnp.zeros_like(acc_ref)

    acc_ref[...] += jnp.dot(
        x_ref[...], w_ref[...], preferred_element_type=jnp.float32
    )

    @pl.when(pl.program_id(2) == pl.num_programs(2) - 1)
    def _():
        o_ref[...] = acc_ref[...].astype(o_ref.dtype)


def matmul(x, w):
    # x: (M, K), w: (K, N) -> (M, N) in x.dtype
    M, K = x.shape
    _, N = w.shape
    tm = _pick_tile(M, (256, 128))
    tn = _pick_tile(N, (512, 256, 128))
    tk = _pick_tile(K, (512, 256, 128))
    cost = pl.CostEstimate(
        flops=2 * M * N * K,
        transcendentals=0,
        bytes_accessed=(M * K + K * N + M * N) * x.dtype.itemsize,
    )
    return pl.pallas_call(
        _matmul_kernel,
        grid=(M // tm, N // tn, K // tk),
        in_specs=[
            pl.BlockSpec((tm, tk), lambda m, n, k: (m, k)),
            pl.BlockSpec((tk, tn), lambda m, n, k: (k, n)),
        ],
        out_specs=pl.BlockSpec((tm, tn), lambda m, n, k: (m, n)),
        out_shape=jax.ShapeDtypeStruct((M, N), x.dtype),
        scratch_shapes=[pltpu.VMEM((tm, tn), jnp.float32)],
        compiler_params=pltpu.CompilerParams(
            dimension_semantics=("parallel", "parallel", "arbitrary"),
            vmem_limit_bytes=VMEM_LIMIT_BYTES,
        ),
        cost_estimate=cost,
    )(x, w)


# -------------------- fused RMSNorm + SwiGLU FFN kernel ----------------------
def _ffn_kernel(x_ref, g_ref, w1_ref, w3_ref, w2_ref, o_ref, xn_ref, acc_ref, *, eps):
    h = pl.program_id(1)

    @pl.when(h == 0)
    def _():
        x = x_ref[...].astype(jnp.float32)                   # (tm, C)
        ms = jnp.mean(x * x, axis=-1, keepdims=True)
        xn = x * jax.lax.rsqrt(ms + eps) * g_ref[...].astype(jnp.float32)
        xn_ref[...] = xn.astype(xn_ref.dtype)                # cache normalized x (bf16)
        acc_ref[...] = jnp.zeros_like(acc_ref)

    xn = xn_ref[...]                                         # (tm, C) bf16
    x1 = jnp.dot(xn, w1_ref[...], preferred_element_type=jnp.float32)   # (tm, th)
    x1 = x1 * jax.nn.sigmoid(x1)                             # SiLU in f32 (EUP exp)
    x3 = jnp.dot(xn, w3_ref[...], preferred_element_type=jnp.float32)
    hb = (x1 * x3).astype(w2_ref.dtype)                      # single f32->bf16 cast
    acc_ref[...] += jnp.dot(hb, w2_ref[...], preferred_element_type=jnp.float32)

    @pl.when(h == pl.num_programs(1) - 1)
    def _():
        o_ref[...] = acc_ref[...].astype(o_ref.dtype)


def ffn(x, g, w1, w3, w2, eps):
    # x: (M, C) bf16 (pre-norm), g: (C,) f32, w1/w3: (C, H), w2: (H, C)
    M, C = x.shape
    _, H = w1.shape
    tm = _pick_tile(M, (256, 128))
    th = _pick_tile(H, (256, 128))
    cost = pl.CostEstimate(
        flops=6 * M * C * H,
        transcendentals=M * H,
        bytes_accessed=(2 * M * C + 3 * C * H) * x.dtype.itemsize,
    )
    return pl.pallas_call(
        partial(_ffn_kernel, eps=eps),
        grid=(M // tm, H // th),
        in_specs=[
            pl.BlockSpec((tm, C), lambda m, h: (m, 0)),
            pl.BlockSpec((1, C), lambda m, h: (0, 0)),
            pl.BlockSpec((C, th), lambda m, h: (0, h)),
            pl.BlockSpec((C, th), lambda m, h: (0, h)),
            pl.BlockSpec((th, C), lambda m, h: (h, 0)),
        ],
        out_specs=pl.BlockSpec((tm, C), lambda m, h: (m, 0)),
        out_shape=jax.ShapeDtypeStruct((M, C), x.dtype),
        scratch_shapes=[
            pltpu.VMEM((tm, C), x.dtype),        # cached normalized x
            pltpu.VMEM((tm, C), jnp.float32),    # w2 accumulator
        ],
        compiler_params=pltpu.CompilerParams(
            dimension_semantics=("parallel", "arbitrary"),
            vmem_limit_bytes=VMEM_LIMIT_BYTES,
        ),
        cost_estimate=cost,
    )(x, g.reshape(1, C), w1, w3, w2)


# ----------------- flash attention (RoPE + online softmax) -------------------
def _rotate_half(x, hd):
    # torch: cat([-x[:, hd/2:], x[:, :hd/2]], -1)
    if hd % 128 == 0:
        # lane rotation on the XLU slot + sign select (no slice/concat copies)
        sign = jnp.where(
            jax.lax.broadcasted_iota(jnp.int32, x.shape, 1) < (hd // 2), -1.0, 1.0
        ).astype(x.dtype)
        return pltpu.roll(x, hd // 2, axis=1) * sign
    # small head_dim fallback (demo config): slice + concat
    return jnp.concatenate([-x[:, hd // 2:], x[:, : hd // 2]], axis=-1)


def _apply_rope_f32(x_bf16, sin, cos, hd):
    x = x_bf16.astype(jnp.float32)
    return x * cos + _rotate_half(x, hd) * sin


def _flash_attn_kernel(q_ref, k_ref, v_ref, sin_q_ref, cos_q_ref, sin_k_ref, cos_k_ref,
                       o_ref, m_sc, l_sc, acc_sc, *, scale, hd, tq, tkv):
    qi = pl.program_id(2)
    ki = pl.program_id(3)

    @pl.when(ki == 0)
    def _():
        m_sc[...] = jnp.full_like(m_sc, -1e30)
        l_sc[...] = jnp.zeros_like(l_sc)
        acc_sc[...] = jnp.zeros_like(acc_sc)

    q_last_row = qi * tq + (tq - 1)
    kv_start = ki * tkv

    # Skip KV blocks that are entirely above the causal diagonal.
    @pl.when(kv_start <= q_last_row)
    def _():
        # RoPE; fold the 1/sqrt(hd) scale into q (O(T*h) instead of O(T^2)).
        q = (_apply_rope_f32(q_ref[...], sin_q_ref[...], cos_q_ref[...], hd) * scale
             ).astype(q_ref.dtype)
        k = _apply_rope_f32(k_ref[...], sin_k_ref[...], cos_k_ref[...], hd
                            ).astype(k_ref.dtype)

        # Contract on the last dims: no explicit k.T materialization.
        s = jax.lax.dot_general(
            q, k, (((1,), (1,)), ((), ())), preferred_element_type=jnp.float32
        )                                                     # (tq, tkv) f32
        row = qi * tq + jax.lax.broadcasted_iota(jnp.int32, (tq, tkv), 0)
        col = kv_start + jax.lax.broadcasted_iota(jnp.int32, (tq, tkv), 1)
        s = jnp.where(col <= row, s, -1e30)                   # causal mask

        m_prev = m_sc[...]
        m_new = jnp.maximum(m_prev, jnp.max(s, axis=-1, keepdims=True))
        alpha = jnp.exp(m_prev - m_new)
        p = jnp.exp(s - m_new)
        l_sc[...] = alpha * l_sc[...] + jnp.sum(p, axis=-1, keepdims=True)
        acc_sc[...] = alpha * acc_sc[...] + jnp.dot(
            p.astype(v_ref.dtype), v_ref[...], preferred_element_type=jnp.float32
        )
        m_sc[...] = m_new

    @pl.when(ki == pl.num_programs(3) - 1)
    def _():
        o_ref[...] = (
            acc_sc[...] * pl.reciprocal(l_sc[...], approx=True)
        ).astype(o_ref.dtype)


def attention(q, k, v, sin, cos, scale):
    # q,k,v: (B, n_head, T, hd) bf16 ; sin,cos: (T, hd) f32
    # TODO(synk): pack >=2 heads per grid step when head_dim < 128 for lane-dense stores.
    B, nh, T, hd = q.shape
    tq = _pick_tile(T, (256, 128))
    tkv = _pick_tile(T, (256, 128))
    q_spec = pl.BlockSpec((None, None, tq, hd), lambda b, h, qi, ki: (b, h, qi, 0))
    kv_spec = pl.BlockSpec((None, None, tkv, hd), lambda b, h, qi, ki: (b, h, ki, 0))
    sc_q = pl.BlockSpec((tq, hd), lambda b, h, qi, ki: (qi, 0))
    sc_k = pl.BlockSpec((tkv, hd), lambda b, h, qi, ki: (ki, 0))
    cost = pl.CostEstimate(
        flops=4 * B * nh * T * T * hd,
        transcendentals=B * nh * T * T,
        bytes_accessed=4 * B * nh * T * hd * q.dtype.itemsize,
    )
    return pl.pallas_call(
        partial(_flash_attn_kernel, scale=scale, hd=hd, tq=tq, tkv=tkv),
        grid=(B, nh, T // tq, T // tkv),
        in_specs=[q_spec, kv_spec, kv_spec, sc_q, sc_q, sc_k, sc_k],
        out_specs=q_spec,
        out_shape=jax.ShapeDtypeStruct((B, nh, T, hd), q.dtype),
        scratch_shapes=[
            pltpu.VMEM((tq, 1), jnp.float32),    # running max
            pltpu.VMEM((tq, 1), jnp.float32),    # running denom
            pltpu.VMEM((tq, hd), jnp.float32),   # output accumulator
        ],
        compiler_params=pltpu.CompilerParams(
            dimension_semantics=("parallel", "parallel", "parallel", "arbitrary"),
            vmem_limit_bytes=VMEM_LIMIT_BYTES,
        ),
        cost_estimate=cost,
    )(q, k, v, sin, cos, sin, cos)


# ------------------------------- model glue ----------------------------------
def precompute_rope(block_size, n_embd, n_head):
    h = n_embd // n_head
    pos = jnp.arange(block_size, dtype=jnp.float32)
    thetas = 1.0 / (10000.0 ** (jnp.arange(0, h, 2, dtype=jnp.float32) / h))
    pt = jnp.outer(pos, thetas)
    pt = jnp.concatenate([pt, pt], axis=-1)                   # (block_size, h)
    return jnp.sin(pt), jnp.cos(pt)


def init_params(key, cfg):
    dt = cfg["dtype"]
    C, H, V = cfg["n_embd"], cfg["n_hidden"], cfg["vocab_size"]

    def nrm(k, shape):
        return (0.02 * jax.random.normal(k, shape, dtype=jnp.float32)).astype(dt)

    keys = jax.random.split(key, 2 + 7 * cfg["n_layer"])
    params = {
        "tok_emb": nrm(keys[0], (V, C)),
        "w_out": nrm(keys[1], (C, V)),
        "final_norm": jnp.ones((C,), jnp.float32),
        "layers": [],
    }
    ki = 2
    for _ in range(cfg["n_layer"]):
        wq = nrm(keys[ki + 0], (C, C))
        wk = nrm(keys[ki + 1], (C, C))
        wv = nrm(keys[ki + 2], (C, C))
        layer = {
            "wqkv": jnp.concatenate([wq, wk, wv], axis=1),    # fused QKV weight (C, 3C)
            "wo": nrm(keys[ki + 3], (C, C)),
            "w1": nrm(keys[ki + 4], (C, H)),
            "w3": nrm(keys[ki + 5], (C, H)),
            "w2": nrm(keys[ki + 6], (H, C)),
            "attn_norm": jnp.ones((C,), jnp.float32),
            "ffn_norm": jnp.ones((C,), jnp.float32),
        }
        params["layers"].append(layer)
        ki += 7
    sin, cos = precompute_rope(cfg["block_size"], cfg["n_embd"], cfg["n_head"])
    params["sin"], params["cos"] = sin, cos
    return params


def llama2_forward(params, ids, cfg):
    B, T = ids.shape
    C = cfg["n_embd"]
    nh = cfg["n_head"]
    hd = C // nh
    eps = cfg["norm_eps"]
    M = B * T
    scale = 1.0 / math.sqrt(hd)

    # TODO(synk): token-embedding gather stays in plain JAX (jnp.take); could be a Pallas DMA-gather kernel.
    x = jnp.take(params["tok_emb"], ids, axis=0)              # (B, T, C) bf16
    sin, cos = params["sin"][:T], params["cos"][:T]

    for layer in params["layers"]:
        # --- attention block: fused RMSNorm + QKV projection, flash attention, wo ---
        xf = x.reshape(M, C)
        qkv = rmsnorm_matmul(xf, layer["attn_norm"], layer["wqkv"], eps)  # (M, 3C)
        qkv = qkv.reshape(B, T, 3, nh, hd)
        # TODO(synk): q/k/v could be written directly in (B, nh, T, hd) layout by the
        #             projection kernel's out BlockSpec to avoid these XLA transposes.
        q = qkv[:, :, 0].transpose(0, 2, 1, 3)
        k = qkv[:, :, 1].transpose(0, 2, 1, 3)
        v = qkv[:, :, 2].transpose(0, 2, 1, 3)
        ao = attention(q, k, v, sin, cos, scale)              # (B, nh, T, hd)
        ao = ao.transpose(0, 2, 1, 3).reshape(M, C)
        x = x + matmul(ao, layer["wo"]).reshape(B, T, C)

        # --- feed-forward block: fused RMSNorm + SwiGLU ---
        ff = ffn(x.reshape(M, C), layer["ffn_norm"],
                 layer["w1"], layer["w3"], layer["w2"], eps)
        x = x + ff.reshape(B, T, C)

    # --- final norm + logit projection (fused, tiled over vocab) ---
    logits = rmsnorm_matmul(x.reshape(M, C), params["final_norm"], params["w_out"], eps)
    return logits.reshape(B, T, cfg["vocab_size"])


if __name__ == "__main__":
    cfg = {
        "block_size": 8,
        "vocab_size": 256,
        "n_layer": 2,
        "n_head": 4,
        "n_embd": 64,
        "norm_eps": 1e-5,
        "n_hidden": 128,
        "dtype": jnp.bfloat16,
    }

    key = jax.random.PRNGKey(0)
    pkey, ikey = jax.random.split(key)
    params = init_params(pkey, cfg)

    B, T = 2, cfg["block_size"]
    token_ids = jax.random.randint(ikey, (B, T), 0, cfg["vocab_size"], dtype=jnp.int32)

    logits = llama2_forward(params, token_ids, cfg)
    logits = jax.block_until_ready(logits)

    assert logits.shape == (B, T, cfg["vocab_size"])
    assert logits.dtype == jnp.bfloat16
    assert bool(jnp.all(jnp.isfinite(logits.astype(jnp.float32))))
    print("KERNEL_OK")
</pallas_src>

<mosaic_0001>
module attributes {stable_mosaic.version = 11 : i64} {
  func.func @_rmsnorm_matmul_kernel(%arg0: i32, %arg1: i32, %arg2: memref<16x64xbf16, #tpu.memory_space<vmem>>, %arg3: memref<1x64xf32, #tpu.memory_space<vmem>>, %arg4: memref<64x192xbf16, #tpu.memory_space<vmem>>, %arg5: memref<16x192xbf16, #tpu.memory_space<vmem>>) attributes {dimension_semantics = [#tpu.dimension_semantics<parallel>, #tpu.dimension_semantics<parallel>], iteration_bounds = array<i64: 1, 1>, scalar_prefetch = 0 : i64, scratch_operands = 0 : i64, tpu.core_type = #tpu.core_type<tc>, window_params = [{transform_indices = @transform_0, window_bounds = array<i64: 16, 64>}, {pipeline_mode = #tpu.pipeline_mode<synchronous>, transform_indices = @transform_1, window_bounds = array<i64: 1, 64>}, {transform_indices = @transform_2, window_bounds = array<i64: 64, 192>}, {transform_indices = @transform_3, window_bounds = array<i64: 16, 192>}]} {
    %c0 = arith.constant 0 : index
    %c0_0 = arith.constant 0 : index
    %0 = vector.load %arg2[%c0, %c0_0] : memref<16x64xbf16, #tpu.memory_space<vmem>>, vector<16x64xbf16>
    %1 = arith.extf %0 : vector<16x64xbf16> to vector<16x64xf32>
    %2 = arith.mulf %1, %1 : vector<16x64xf32>
    %cst = arith.constant dense<0.000000e+00> : vector<16xf32>
    %3 = vector.multi_reduction <add>, %2, %cst [1] : vector<16x64xf32> to vector<16xf32>
    %4 = vector.shape_cast %3 : vector<16xf32> to vector<16x1xf32>
    %cst_1 = arith.constant 6.400000e+01 : f32
    %5 = vector.broadcast %cst_1 : f32 to vector<16x1xf32>
    %6 = arith.divf %4, %5 : vector<16x1xf32>
    %cst_2 = arith.constant 9.99999974E-6 : f32
    %7 = vector.broadcast %cst_2 : f32 to vector<16x1xf32>
    %8 = arith.addf %6, %7 : vector<16x1xf32>
    %9 = math.rsqrt %8 : vector<16x1xf32>
    %10 = vector.broadcast %9 : vector<16x1xf32> to vector<16x64xf32>
    %11 = arith.mulf %1, %10 : vector<16x64xf32>
    %c0_3 = arith.constant 0 : index
    %c0_4 = arith.constant 0 : index
    %12 = vector.load %arg3[%c0_3, %c0_4] : memref<1x64xf32, #tpu.memory_space<vmem>>, vector<1x64xf32>
    %13 = vector.broadcast %12 : vector<1x64xf32> to vector<16x64xf32>
    %14 = arith.mulf %11, %13 : vector<16x64xf32>
    %15 = arith.truncf %14 : vector<16x64xf32> to vector<16x64xbf16>
    %c0_5 = arith.constant 0 : index
    %c0_6 = arith.constant 0 : index
    %16 = vector.load %arg4[%c0_5, %c0_6] : memref<64x192xbf16, #tpu.memory_space<vmem>>, vector<64x192xbf16>
    %cst_7 = arith.constant dense<0.000000e+00> : vector<16x192xf32>
    %17 = tpu.matmul %15, %16, %cst_7 {dimension_numbers = #tpu.dot_dimension_numbers<[1], [0], [0], [1], [0, 0, 1, 1], [], []>} : vector<16x64xbf16>, vector<64x192xbf16>, vector<16x192xf32> -> vector<16x192xf32>
    %18 = arith.truncf %17 : vector<16x192xf32> to vector<16x192xbf16>
    %c0_8 = arith.constant 0 : index
    %c0_9 = arith.constant 0 : index
    %19 = vector.load %arg5[%c0_8, %c0_9] : memref<16x192xbf16, #tpu.memory_space<vmem>>, vector<16x192xbf16>
    tpu.vector_store %arg5[%c0_8, %c0_9], %18 {strides = array<i32>} : memref<16x192xbf16, #tpu.memory_space<vmem>>, vector<16x192xbf16>,
    return
  }
  func.func @transform_0(%arg0: i32, %arg1: i32) -> (i32, i32) {
    %c0_i32 = arith.constant 0 : i32
    %c0_i32_0 = arith.constant 0 : i32
    return %arg0, %c0_i32 : i32, i32
  }
  func.func @transform_1(%arg0: i32, %arg1: i32) -> (i32, i32) {
    %c0_i32 = arith.constant 0 : i32
    %c0_i32_0 = arith.constant 0 : i32
    %c0_i32_1 = arith.constant 0 : i32
    return %c0_i32, %c0_i32_0 : i32, i32
  }
  func.func @transform_2(%arg0: i32, %arg1: i32) -> (i32, i32) {
    %c0_i32 = arith.constant 0 : i32
    %c0_i32_0 = arith.constant 0 : i32
    return %c0_i32, %arg1 : i32, i32
  }
  func.func @transform_3(%arg0: i32, %arg1: i32) -> (i32, i32) {
    %c0_i32 = arith.constant 0 : i32
    return %arg0, %arg1 : i32, i32
  }
}

</mosaic_0001>

<bundles_post_ra>
// kernel: tpu_custom_call.1
= control target key start
LH: loop header
LB: loop body
LE: loop exit
PB: predicated region body
PF: predicated region fallthrough
CT: control target
= control target key end

     0   :  { %8 = vsyncpa [#allocation3], 0  ;;  %s362_s0 = inlined_call_operand.hbm [shape: bf16[16,64], index: 0, kind: input, shape index: {}]   ;;  %s363_s1 = inlined_call_operand.vmem [shape: f32[1,64], index: 1, kind: input, shape index: {}]   ;;  %s364_s2 = inlined_call_operand.hbm [shape: bf16[64,192], index: 2, kind: input, shape index: {}]   ;;  %s365_s3 = inlined_call_operand.hbm [shape: bf16[16,192], index: 3, kind: output, shape index: {}]  }
   0x1   :  { %9 = vsyncpa [#allocation6], 0 }
   0x2   :  { %10 = vsyncpa [#allocation4], 0  ;;  %s313_s12 = smov [#allocation2]  }
   0x3   :  { %s16_s13 = sshll.u32 %s313_s12, 4  ;;  %s17_s13 = int_to_ptr.vmem [resolvable:$true] %s16_s13 }
   0x4   :  { %s255_s14 = scalar_lea.vmem %s17_s13, 128  ;;  %p260_p1 = scmp.lt.s32.totalorder %s17_s13, %s17_s13 }
   0x5   :  { %p256_p0 = scmp.ne.s32.totalorder %s17_s13, %s255_s14  ;;  %p261_p2 = scmp.lt.s32.totalorder %s255_s14, %s255_s14 }
   0x7   :  { %p262_p3 = por %p261_p2, %p260_p1 }
   0x9   :  { %p263_p4 = pnand %p262_p3, %p256_p0 }
   0xb   :  { %266 = shalt.err (!%p263_p4)
}
   0xc   :  { %s314_s15 = smov 64   ;;  %s315_s16 = smov 4  }
   0xd   :  { %22 = dma.hbm_to_vmem [thread:$0]  %s362_s0, 128, %s17_s13, [#allocation3], %s314_s15, %s314_s15, %s315_s16  }
   0xe   :  { %s316_s19 = smov [#allocation5]  }
   0xf   :  { %s30_s20 = sshll.u32 %s316_s19, 4  ;;  %s31_s20 = int_to_ptr.vmem [resolvable:$true] %s30_s20 }
  0x10   :  { %s275_s21 = scalar_lea.vmem %s31_s20, 1024  ;;  %p280_p6 = scmp.lt.s32.totalorder %s31_s20, %s31_s20 }
  0x11   :  { %p276_p5 = scmp.ne.s32.totalorder %s31_s20, %s275_s21  ;;  %p281_p7 = scmp.lt.s32.totalorder %s275_s21, %s275_s21 }
  0x13   :  { %p282_p8 = por %p281_p7, %p280_p6 }
  0x15   :  { %p283_p9 = pnand %p282_p8, %p276_p5 }
  0x17   :  { %286 = shalt.err (!%p283_p9)
}
  0x18   :  { %s317_s22 = smov 128   ;;  %s318_s23 = smov 8  }
  0x19   :  { %36 = dma.hbm_to_vmem [thread:$0]  %s364_s2, 1024, %s31_s20, [#allocation6], %s317_s22, %s317_s22, %s318_s23  }
  0x1a   :  { %307 = dma.done.wait [#allocation3], 128  }
  0x1b   :  { %308 = vsyncadd [#allocation3], 4294967168 }
  0x1c   :  { %309 = dma.done.wait [#allocation6], 1024  }
  0x1d   :  { %310 = vsyncadd [#allocation6], 4294966272  ;;  %v220_v0 = vld [vmem:[#allocation2] sm:$0xff]   ;;  %vm50_vm0 = vcmask 523264   ;;  %v234_v9 = vld [vmem:[#allocation5 + $0x24] ss:$8 sps:$4 sm:$0xff]  }
  0x1e   :  { %v221_v1 = vunpack.c.l.bf16 %v220_v0  ;;  %v222_v2 = vunpack.c.h.bf16 %v220_v0  ;;  %v231_v7 = vld [vmem:[#allocation5 + $0x34] ss:$8 sps:$4 sm:$0xff]   ;;  %v233_v8 = vld [vmem:[#allocation5 + $0x30] ss:$8 sps:$4 sm:$0xff]   ;;  %v236_v10 = vld [vmem:[#allocation5 + $0x20] ss:$8 sps:$4 sm:$0xff]  }
  0x1f   :  { %135 = vmatprep.subr.bf16.mxu0 %v231_v7  ;;  %v319_v11 = vmov 0   ;;  %v237_v12 = vld [vmem:[#allocation5 + $0x14] ss:$8 sps:$4 sm:$0xff]   ;;  %v239_v13 = vld [vmem:[#allocation5 + $0x10] ss:$8 sps:$4 sm:$0xff]   ;;  %vm182_vm1 = vcmask 1043456  }
  0x20   :  { %v48_v3 = vmul.f32 %v221_v1, %v221_v1  ;;  %v49_v4 = vmul.f32 %v222_v2, %v222_v2  ;;  %136 = vmatpush1.bf16.msra.mxu0 %v233_v8  ;;  %159 = vmatprep.mubr.bf16.mxu0 %v319_v11  ;;  %v240_v14 = vld [vmem:[#allocation5 + $0x4] ss:$8 sps:$4 sm:$0xff]   ;;  %v242_v15 = vld [vmem:[#allocation5] ss:$8 sps:$4 sm:$0xff]   ;;  %v205_v25 = vld [vmem:[%s363_s1] ss:$0 sm:$0xff] }
  0x21   :  { %137 = vmatprep.subr.bf16.mxu0 %v234_v9  ;;  %vm183_vm2 = vcmask 523268   ;;  %s320_s26 = smov [#allocation7]  }
  0x22   :  { %v51_v5 = vsel %vm50_vm0, %v48_v3, 0.0  ;;  %v54_v6 = vsel %vm50_vm0, %v49_v4, 0.0  ;;  %vm184_vm3 = vmor %vm183_vm2, %vm182_vm1  ;;  %s192_s27 = sshll.u32 %s320_s26, 4  ;;  %s193_s27 = int_to_ptr.vmem [resolvable:$true] %s192_s27 }
  0x23   :  { %52 = vadd.xlane.f32.xlu0 %v51_v5  ;;  %s287_s1 = scalar_lea.vmem %s193_s27, 256  ;;  %p292_p11 = scmp.lt.s32.totalorder %s193_s27, %s193_s27 }
  0x24   :  { %138 = vmatpush1.bf16.msra.mxu0 %v236_v10  ;;  %p288_p10 = scmp.ne.s32.totalorder %s193_s27, %s287_s1  ;;  %p293_p12 = scmp.lt.s32.totalorder %s287_s1, %s287_s1 }
  0x25   :  { %139 = vmatprep.subr.bf16.mxu0 %v237_v12 }
  0x26   :  { %p294_p13 = por %p293_p12, %p292_p11 }
  0x27   :  { %55 = vadd.xlane.f32.xlu0 %v54_v6 }
  0x28   :  { %140 = vmatpush1.bf16.msra.mxu0 %v239_v13  ;;  %p295_p0 = pnand %p294_p13, %p288_p10 }
  0x29   :  { %141 = vmatprep.subr.bf16.mxu0 %v240_v14 }
  0x2c   :  { %142 = vmatpush1.bf16.msra.mxu0 %v242_v15 }
  0xac   :  { %v53_v16 = vpop.xlane.xlu0 %52 }
  0xad   :  { %v58_v17 = vmul.f32 0.015625, %v53_v16 }
  0xaf   :  { %v60_v18 = vadd.f32 1e-05, %v58_v17 }
  0xb0   :  { %v56_v19 = vpop.xlane.xlu0 %55 }
  0xb1   :  { %243 = vrsqrt.f32 %v60_v18  ;;  %v59_v20 = vmul.f32 0.015625, %v56_v19 }
  0xb3   :  { %v61_v21 = vadd.f32 1e-05, %v59_v20 }
  0xb5   :  { %245 = vrsqrt.f32 %v61_v21 }
  0xbe   :  { %v244_v22 = vpop.eup %243 }
  0xbf   :  { %v64_v23 = vmul.f32 %v244_v22, %v221_v1 }
  0xc1   :  { %v73_v27 = vmul.f32 %v205_v25, %v64_v23 }
  0xc2   :  { %v246_v24 = vpop.eup %245 }
  0xc3   :  { %v65_v26 = vmul.f32 %v246_v24, %v222_v2 }
  0xc5   :  { %v74_v28 = vmul.f32 %v205_v25, %v65_v26 }
  0xc7   :  { %v75_v29 = vpack.c.bf16 %v74_v28, %v73_v27 }
  0xc9   :  { %214 = vmatmul.mubr.msk.bf16.vlgmr.msra.gmra.mxu0 %vm50_vm0, %v75_v29 }
 0x189   :  { %v161_v30 = vpop.f32.mrf.mxu0 }
 0x18b   :  { %v163_v31 = vpop.f32.mrf.mxu0 }
 0x18c   :  { %v217_v32 = vpack.c.bf16 %v163_v31, %v161_v30 }
 0x18d   :  { %v165_v33 = vpop.f32.mrf.mxu0 }
 0x18e   :  { %185 = vst.msk [vmem:[#allocation7] sm:$0xff] %vm184_vm3, %v217_v32 }
 0x18f   :  { %v167_v34 = vpop.f32.mrf.mxu0 }
 0x190   :  { %v218_v35 = vpack.c.bf16 %v167_v34, %v165_v33 }
 0x192   :  { %186 = vst.msk [vmem:[#allocation7 + $0x8] sm:$0xff] %vm184_vm3, %v218_v35 }
 0x193   :  { %298 = shalt.err (!%p295_p0)
}
 0x194   :  { %198 = dma.vmem_to_hbm [thread:$0]  %s193_s27, 256, %s365_s3, [#allocation4], %s317_s22, %s317_s22, %s318_s23  }
 0x195   :  { %311 = dma.done.wait [#allocation4], 256  }
 0x196   :  { %312 = vsyncadd [#allocation4], 4294967040 }
 0x197   :  { %202 = vsyncpa [#allocation3], 1 }
 0x198   :  { %203 = vsyncpa [#allocation6], 1 }
 0x199   :  { %204 = vsyncpa [#allocation4], 1 }

</bundles_post_ra>
